<compile_context>
chip_gen: v7x
topology: tpu7x:2x2x1
jax: 0.10.0
libtpu: 0.0.40
codegen_flags: <defaults>
</compile_context>

<pallas_src>
import functools

import jax
import jax.numpy as jnp
from jax.experimental import pallas as pl
from jax.experimental.pallas import tpu as pltpu


def _round_up(x, m):
    return ((x + m - 1) // m) * m


def _cdiv(a, b):
    return (a + b - 1) // b


# ---------------------------------------------------------------------------
# Kernels
# ---------------------------------------------------------------------------
def _patch_embed_kernel_resident(x_ref, w_ref, b_ref, o_ref):
    """Single-K-tile path: weight/bias resident, no scratch, direct store."""
    acc = jnp.dot(x_ref[...], w_ref[...], preferred_element_type=jnp.float32)
    o_ref[...] = (acc + b_ref[...]).astype(o_ref.dtype)


def _patch_embed_kernel_acc(x_ref, w_ref, b_ref, o_ref, acc_ref):
    """Fallback (M, E, K)-tiled path with f32 VMEM accumulator."""
    @pl.when(pl.program_id(2) == 0)
    def _():
        acc_ref[...] = jnp.zeros_like(acc_ref)

    acc_ref[...] += jnp.dot(x_ref[...], w_ref[...],
                            preferred_element_type=jnp.float32)

    @pl.when(pl.program_id(2) == pl.num_programs(2) - 1)
    def _():
        o_ref[...] = (acc_ref[...] + b_ref[...]).astype(o_ref.dtype)


# VMEM working-set budget (bytes).  Safe under the v5e 16 MiB default scoped
# VMEM (v6e/v7x default to 32 MiB), leaving headroom for internal scratch.
_VMEM_BUDGET = 12 * 1024 * 1024


def _resident_working_set(tm, k_pad, e_pad, out_bytes):
    # x (2 bufs, bf16) + weight (2 bufs, bf16) + bias (f32) + out (2 bufs).
    return (2 * tm * k_pad * 2
            + 2 * k_pad * e_pad * 2
            + 2 * e_pad * 4
            + 2 * tm * e_pad * out_bytes)


def _select_tm_resident(M, k_pad, e_pad, out_bytes):
    """Pick TM minimizing M padding, preferring >=2 M blocks for large M."""
    cands = {1024, 512, 256, 128}
    cands.add(_round_up(min(M, 1024), 8))
    best = None
    for tm in sorted(cands, reverse=True):
        if _resident_working_set(tm, k_pad, e_pad, out_bytes) > _VMEM_BUDGET:
            continue
        m_pad = _round_up(M, tm)
        nblk = m_pad // tm
        # Prefer: (a) >=2 M blocks when M is big (v7x megacore utilization),
        #         (b) minimal padding, (c) larger tiles.
        key = (0 if (M < 256 or nblk >= 2) else 1, m_pad - M, -tm)
        if best is None or key < best[0]:
            best = (key, tm)
    return None if best is None else best[1]


def patch_embed_matmul(patches, w_t, bias, out_dtype=jnp.bfloat16):
    """patches: (M, K), w_t: (K, E), bias: (E,) -> (M, E) in out_dtype.

    bf16 MXU operands, f32 accumulation.
    """
    M, K = patches.shape
    _, E = w_t.shape
    out_bytes = jnp.dtype(out_dtype).itemsize

    K_pad = _round_up(K, 128)
    E_pad = _round_up(E, 128)

    x = patches.astype(jnp.bfloat16)          # no-op if already bf16
    w = w_t.astype(jnp.bfloat16)
    b = bias.astype(jnp.float32).reshape(1, E)
    if (K_pad, E_pad) != (K, E):
        w = jnp.pad(w, ((0, K_pad - K), (0, E_pad - E)))
    if E_pad != E:
        b = jnp.pad(b, ((0, 0), (0, E_pad - E)))

    tm = _select_tm_resident(M, K_pad, E_pad, out_bytes)

    if tm is not None:
        # --- resident-weight path: 1-D grid over M, single K tile. ---------
        M_pad = _round_up(M, tm)
        if (M_pad, K_pad) != (M, K):
            x = jnp.pad(x, ((0, M_pad - M), (0, K_pad - K)))

        cost = pl.CostEstimate(
            flops=2 * M_pad * K_pad * E_pad,
            transcendentals=0,
            bytes_accessed=int(M_pad * K_pad * 2 + K_pad * E_pad * 2
                               + M_pad * E_pad * out_bytes + E_pad * 4),
        )
        out = pl.pallas_call(
            _patch_embed_kernel_resident,
            out_shape=jax.ShapeDtypeStruct((M_pad, E_pad), out_dtype),
            grid_spec=pltpu.PrefetchScalarGridSpec(
                num_scalar_prefetch=0,
                grid=(M_pad // tm,),
                in_specs=[
                    pl.BlockSpec((tm, K_pad), lambda i: (i, 0)),
                    pl.BlockSpec((K_pad, E_pad), lambda i: (0, 0)),  # resident
                    pl.BlockSpec((1, E_pad), lambda i: (0, 0)),      # resident
                ],
                out_specs=pl.BlockSpec((tm, E_pad), lambda i: (i, 0)),
            ),
            compiler_params=pltpu.CompilerParams(
                dimension_semantics=("parallel",),
            ),
            cost_estimate=cost,
        )(x, w, b)
    else:
        # --- fallback: tiled (M, E, K) with f32 accumulator. ----------------
        TM = 512 if M >= 512 else _round_up(M, 8)
        M_pad = _round_up(M, TM)
        TE = 256 if E_pad % 256 == 0 else 128
        n_k = _cdiv(K_pad, 2048)
        TK = _round_up(_cdiv(K_pad, n_k), 128)   # keeps K padding < 128/tile
        K_pad2 = _round_up(K_pad, TK)

        if (M_pad, K_pad2) != (M, K):
            x = jnp.pad(x, ((0, M_pad - M), (0, K_pad2 - K)))
        if K_pad2 != K_pad:
            w = jnp.pad(w, ((0, K_pad2 - K_pad), (0, 0)))

        cost = pl.CostEstimate(
            flops=2 * M_pad * K_pad2 * E_pad,
            transcendentals=0,
            bytes_accessed=int(x.size * 2 + w.size * 2
                               + M_pad * E_pad * out_bytes + E_pad * 4),
        )
        out = pl.pallas_call(
            _patch_embed_kernel_acc,
            out_shape=jax.ShapeDtypeStruct((M_pad, E_pad), out_dtype),
            grid_spec=pltpu.PrefetchScalarGridSpec(
                num_scalar_prefetch=0,
                grid=(M_pad // TM, E_pad // TE, K_pad2 // TK),
                in_specs=[
                    pl.BlockSpec((TM, TK), lambda i, j, k: (i, k)),
                    pl.BlockSpec((TK, TE), lambda i, j, k: (k, j)),
                    pl.BlockSpec((1, TE), lambda i, j, k: (0, j)),
                ],
                out_specs=pl.BlockSpec((TM, TE), lambda i, j, k: (i, j)),
                scratch_shapes=[pltpu.VMEM((TM, TE), jnp.float32)],
            ),
            compiler_params=pltpu.CompilerParams(
                dimension_semantics=("parallel", "parallel", "arbitrary"),
            ),
            cost_estimate=cost,
        )(x, w, b)

    if (M_pad, E_pad) != (M, E):
        out = out[:M, :E]
    return out


@functools.partial(jax.jit,
                   static_argnames=("patch_size", "tubelet_size", "out_dtype"))
def patch_embed_forward(x, weight, bias, patch_size, tubelet_size,
                        out_dtype=jnp.bfloat16):
    """x: (B, C, T, H, W); weight: (E, C, tubelet, p, p); bias: (E,).

    Returns (B, num_patches, E), matching PyTorch PatchEmbed.forward
    (bf16 output by default; pass out_dtype=jnp.float32 for full-width output).
    """
    B, C, T, H, W = x.shape
    p, t = patch_size, tubelet_size
    E = weight.shape[0]
    Tn, Hn, Wn = T // t, H // p, W // p
    N = Tn * Hn * Wn
    K = C * t * p * p

    # Cast to bf16 *before* the patch extraction so the materialized patch
    # intermediate is half-width; under jit convert+reshape+transpose fuse
    # into a single copy pass over HBM.
    xb = x.astype(jnp.bfloat16)
    xp = xb.reshape(B, C, Tn, t, Hn, p, Wn, p)
    xp = jnp.transpose(xp, (0, 2, 4, 6, 1, 3, 5, 7))   # (B,Tn,Hn,Wn,C,t,p,p)
    patches = xp.reshape(B * N, K)

    w_t = weight.astype(jnp.bfloat16).reshape(E, K).T   # (K, E)

    out = patch_embed_matmul(patches, w_t, bias, out_dtype=out_dtype)
    return out.reshape(B, N, E)


def _reference_forward(x, weight, bias, patch_size, tubelet_size):
    """Pure-JAX f32 reference (conv via einsum over extracted patches)."""
    B, C, T, H, W = x.shape
    p, t = patch_size, tubelet_size
    E = weight.shape[0]
    Tn, Hn, Wn = T // t, H // p, W // p
    xp = x.reshape(B, C, Tn, t, Hn, p, Wn, p)
    xp = jnp.transpose(xp, (0, 2, 4, 6, 1, 3, 5, 7)).reshape(B, Tn * Hn * Wn, -1)
    wk = weight.reshape(E, -1)
    return jnp.einsum("bnk,ek->bne", xp.astype(jnp.float32),
                      wk.astype(jnp.float32)) + bias[None, None, :]


if __name__ == "__main__":
    # Small shapes consistent with the module: img_size=16, patch_size=8,
    # in_chans=4, embed_dim=32, num_frames=4, tubelet_size=2.
    B, C, T, H, W = 2, 4, 4, 16, 16
    patch_size, tubelet_size, embed_dim = 8, 2, 32

    key = jax.random.PRNGKey(0)
    kx, kw, kb = jax.random.split(key, 3)
    x = jax.random.normal(kx, (B, C, T, H, W), dtype=jnp.float32)
    weight = (jax.random.normal(
        kw, (embed_dim, C, tubelet_size, patch_size, patch_size),
        dtype=jnp.float32) * 0.02)
    bias = jax.random.normal(kb, (embed_dim,), dtype=jnp.float32) * 0.02

    out = patch_embed_forward(x, weight, bias, patch_size, tubelet_size)
    out = jax.block_until_ready(out)

    ref = _reference_forward(x, weight, bias, patch_size, tubelet_size)
    num_patches = (T // tubelet_size) * (H // patch_size) * (W // patch_size)
    assert out.shape == (B, num_patches, embed_dim), out.shape
    # bf16 MXU operands / bf16 output with f32 accumulation -> loosened
    # tolerance vs the f32 reference.
    assert jnp.allclose(out.astype(jnp.float32), ref, atol=2e-2, rtol=2e-2), \
        float(jnp.max(jnp.abs(out.astype(jnp.float32) - ref)))

    print("KERNEL_OK")
</pallas_src>

<mosaic_0001>
module attributes {stable_mosaic.version = 11 : i64} {
  func.func @_patch_embed_kernel_resident(%arg0: i32, %arg1: memref<16x512xbf16, #tpu.memory_space<vmem>>, %arg2: memref<512x128xbf16, #tpu.memory_space<vmem>>, %arg3: memref<1x128xf32, #tpu.memory_space<vmem>>, %arg4: memref<16x128xbf16, #tpu.memory_space<vmem>>) attributes {dimension_semantics = [#tpu.dimension_semantics<parallel>], iteration_bounds = array<i64: 1>, scalar_prefetch = 0 : i64, scratch_operands = 0 : i64, tpu.core_type = #tpu.core_type<tc>, window_params = [{transform_indices = @transform_0, window_bounds = array<i64: 16, 512>}, {pipeline_mode = #tpu.pipeline_mode<synchronous>, transform_indices = @transform_1, window_bounds = array<i64: 512, 128>}, {pipeline_mode = #tpu.pipeline_mode<synchronous>, transform_indices = @transform_2, window_bounds = array<i64: 1, 128>}, {transform_indices = @transform_3, window_bounds = array<i64: 16, 128>}]} {
    %c0 = arith.constant 0 : index
    %c0_0 = arith.constant 0 : index
    %0 = vector.load %arg1[%c0, %c0_0] : memref<16x512xbf16, #tpu.memory_space<vmem>>, vector<16x512xbf16>
    %c0_1 = arith.constant 0 : index
    %c0_2 = arith.constant 0 : index
    %1 = vector.load %arg2[%c0_1, %c0_2] : memref<512x128xbf16, #tpu.memory_space<vmem>>, vector<512x128xbf16>
    %cst = arith.constant dense<0.000000e+00> : vector<16x128xf32>
    %2 = tpu.matmul %0, %1, %cst {dimension_numbers = #tpu.dot_dimension_numbers<[1], [0], [0], [1], [0, 0, 1, 1], [], []>} : vector<16x512xbf16>, vector<512x128xbf16>, vector<16x128xf32> -> vector<16x128xf32>
    %c0_3 = arith.constant 0 : index
    %c0_4 = arith.constant 0 : index
    %3 = vector.load %arg3[%c0_3, %c0_4] : memref<1x128xf32, #tpu.memory_space<vmem>>, vector<1x128xf32>
    %4 = vector.broadcast %3 : vector<1x128xf32> to vector<16x128xf32>
    %5 = arith.addf %2, %4 : vector<16x128xf32>
    %6 = arith.truncf %5 : vector<16x128xf32> to vector<16x128xbf16>
    %c0_5 = arith.constant 0 : index
    %c0_6 = arith.constant 0 : index
    %7 = vector.load %arg4[%c0_5, %c0_6] : memref<16x128xbf16, #tpu.memory_space<vmem>>, vector<16x128xbf16>
    tpu.vector_store %arg4[%c0_5, %c0_6], %6 {strides = array<i32>} : memref<16x128xbf16, #tpu.memory_space<vmem>>, vector<16x128xbf16>,
    return
  }
  func.func @transform_0(%arg0: i32) -> (i32, i32) {
    %c0_i32 = arith.constant 0 : i32
    %c0_i32_0 = arith.constant 0 : i32
    return %arg0, %c0_i32 : i32, i32
  }
  func.func @transform_1(%arg0: i32) -> (i32, i32) {
    %c0_i32 = arith.constant 0 : i32
    %c0_i32_0 = arith.constant 0 : i32
    %c0_i32_1 = arith.constant 0 : i32
    return %c0_i32, %c0_i32_0 : i32, i32
  }
  func.func @transform_2(%arg0: i32) -> (i32, i32) {
    %c0_i32 = arith.constant 0 : i32
    %c0_i32_0 = arith.constant 0 : i32
    %c0_i32_1 = arith.constant 0 : i32
    return %c0_i32, %c0_i32_0 : i32, i32
  }
  func.func @transform_3(%arg0: i32) -> (i32, i32) {
    %c0_i32 = arith.constant 0 : i32
    %c0_i32_0 = arith.constant 0 : i32
    return %arg0, %c0_i32 : i32, i32
  }
}

</mosaic_0001>

<bundles_post_ra>
// kernel: patch_embed_forward.1
= control target key start
LH: loop header
LB: loop body
LE: loop exit
PB: predicated region body
PF: predicated region fallthrough
CT: control target
= control target key end

     0   :  { %s660_s1 = inlined_call_operand.vmem [shape: bf16[512,128], index: 1, kind: input, shape index: {}]   ;;  %s661_s0 = inlined_call_operand.vmem [shape: bf16[16,512], index: 0, kind: input, shape index: {}]   ;;  %s662_s2 = inlined_call_operand.vmem [shape: f32[1,128], index: 2, kind: input, shape index: {}]   ;;  %s663_s3 = inlined_call_operand.vmem [shape: bf16[16,128], index: 3, kind: output, shape index: {}]  }
   0x1   :  { %v488_v0 = vld [vmem:[%s660_s1 + $0x40] sm:$0xff]   ;;  %v492_v4 = vld [vmem:[%s660_s1 + $0x48] sm:$0xff]   ;;  %v496_v8 = vld [vmem:[%s660_s1 + $0x50] sm:$0xff]  }
   0x2   :  { %v489_v1 = vld [vmem:[%s660_s1 + $0xc0] sm:$0xff]   ;;  %444 = vmatprep.subr.bf16.mxu0 %v488_v0  ;;  %v493_v5 = vld [vmem:[%s660_s1 + $0xc8] sm:$0xff]   ;;  %v497_v9 = vld [vmem:[%s660_s1 + $0xd0] sm:$0xff]  }
   0x3   :  { %v490_v2 = vld [vmem:[%s660_s1] sm:$0xff]   ;;  %466 = vmatprep.subr.bf16.mxu1 %v489_v1  ;;  %v494_v6 = vld [vmem:[%s660_s1 + $0x8] sm:$0xff]   ;;  %v498_v10 = vld [vmem:[%s660_s1 + $0x10] sm:$0xff]  }
   0x4   :  { %v491_v3 = vld [vmem:[%s660_s1 + $0x80] sm:$0xff]   ;;  %445 = vmatpush3.bf16.msra.mxu0 %v490_v2  ;;  %v495_v7 = vld [vmem:[%s660_s1 + $0x88] sm:$0xff]   ;;  %v499_v11 = vld [vmem:[%s660_s1 + $0x90] sm:$0xff]  }
   0x5   :  { %467 = vmatpush3.bf16.msra.mxu1 %v491_v3  ;;  %446 = vmatprep.subr.bf16.mxu0 %v492_v4  ;;  %v500_v12 = vld [vmem:[%s660_s1 + $0x58] sm:$0xff]   ;;  %v504_v16 = vld [vmem:[%s660_s1 + $0x60] sm:$0xff]   ;;  %v508_v20 = vld [vmem:[%s660_s1 + $0x68] sm:$0xff]  }
   0x6   :  { %468 = vmatprep.subr.bf16.mxu1 %v493_v5  ;;  %v501_v13 = vld [vmem:[%s660_s1 + $0xd8] sm:$0xff]   ;;  %v505_v17 = vld [vmem:[%s660_s1 + $0xe0] sm:$0xff]   ;;  %v509_v21 = vld [vmem:[%s660_s1 + $0xe8] sm:$0xff]  }
   0x7   :  { %v502_v14 = vld [vmem:[%s660_s1 + $0x18] sm:$0xff]   ;;  %v506_v18 = vld [vmem:[%s660_s1 + $0x20] sm:$0xff]   ;;  %v510_v22 = vld [vmem:[%s660_s1 + $0x28] sm:$0xff]  }
   0x8   :  { %447 = vmatpush3.bf16.msra.mxu0 %v494_v6  ;;  %v503_v15 = vld [vmem:[%s660_s1 + $0x98] sm:$0xff]   ;;  %v507_v19 = vld [vmem:[%s660_s1 + $0xa0] sm:$0xff]   ;;  %v511_v23 = vld [vmem:[%s660_s1 + $0xa8] sm:$0xff]  }
   0x9   :  { %469 = vmatpush3.bf16.msra.mxu1 %v495_v7  ;;  %448 = vmatprep.subr.bf16.mxu0 %v496_v8  ;;  %v512_v24 = vld [vmem:[%s660_s1 + $0x70] sm:$0xff]   ;;  %v516_v28 = vld [vmem:[%s660_s1 + $0x78] sm:$0xff]   ;;  %v398_v38 = vld [vmem:[%s662_s2] ss:$0 sm:$0xff] }
   0xa   :  { %470 = vmatprep.subr.bf16.mxu1 %v497_v9  ;;  %v513_v25 = vld [vmem:[%s660_s1 + $0xf0] sm:$0xff]   ;;  %v517_v29 = vld [vmem:[%s660_s1 + $0xf8] sm:$0xff]  }
   0xb   :  { %v514_v26 = vld [vmem:[%s660_s1 + $0x30] sm:$0xff]   ;;  %v518_v30 = vld [vmem:[%s660_s1 + $0x38] sm:$0xff]  }
   0xc   :  { %449 = vmatpush3.bf16.msra.mxu0 %v498_v10  ;;  %v515_v27 = vld [vmem:[%s660_s1 + $0xb0] sm:$0xff]   ;;  %v519_v31 = vld [vmem:[%s660_s1 + $0xb8] sm:$0xff]  }
   0xd   :  { %471 = vmatpush3.bf16.msra.mxu1 %v499_v11  ;;  %450 = vmatprep.subr.bf16.mxu0 %v500_v12  ;;  %v520_v32 = vld [vmem:[%s661_s0] ss:$16 sps:$4 sm:$0xff]   ;;  %v522_v33 = vld [vmem:[%s661_s0 + $0x4] ss:$16 sps:$4 sm:$0xff]   ;;  %v523_v34 = vld [vmem:[%s661_s0 + $0x8] ss:$16 sps:$4 sm:$0xff]  }
   0xe   :  { %472 = vmatprep.subr.bf16.mxu1 %v501_v13  ;;  %v525_v35 = vld [vmem:[%s661_s0 + $0xc] ss:$16 sps:$4 sm:$0xff]   ;;  %334 = vmatprep.mubr.bf16.mxu0 %v522_v33 }
   0xf   :  { %375 = vmatprep.mubr.bf16.mxu1 %v525_v35 }
  0x10   :  { %451 = vmatpush3.bf16.msra.mxu0 %v502_v14 }
  0x11   :  { %473 = vmatpush3.bf16.msra.mxu1 %v503_v15  ;;  %452 = vmatprep.subr.bf16.mxu0 %v504_v16 }
  0x12   :  { %474 = vmatprep.subr.bf16.mxu1 %v505_v17 }
  0x14   :  { %453 = vmatpush3.bf16.msra.mxu0 %v506_v18 }
  0x15   :  { %475 = vmatpush3.bf16.msra.mxu1 %v507_v19  ;;  %454 = vmatprep.subr.bf16.mxu0 %v508_v20 }
  0x16   :  { %476 = vmatprep.subr.bf16.mxu1 %v509_v21 }
  0x18   :  { %455 = vmatpush3.bf16.msra.mxu0 %v510_v22 }
  0x19   :  { %477 = vmatpush3.bf16.msra.mxu1 %v511_v23  ;;  %456 = vmatprep.subr.bf16.mxu0 %v512_v24 }
  0x1a   :  { %478 = vmatprep.subr.bf16.mxu1 %v513_v25 }
  0x1c   :  { %457 = vmatpush3.bf16.msra.mxu0 %v514_v26 }
  0x1d   :  { %479 = vmatpush3.bf16.msra.mxu1 %v515_v27  ;;  %458 = vmatprep.subr.bf16.mxu0 %v516_v28 }
  0x1e   :  { %480 = vmatprep.subr.bf16.mxu1 %v517_v29 }
  0x20   :  { %459 = vmatpush3.bf16.msra.mxu0 %v518_v30 }
  0x21   :  { %481 = vmatpush3.bf16.msra.mxu1 %v519_v31 }
  0x23   :  { %335 = vmatmul.mubr.bf16.vlgmr.msra.gmra.mrb[0].mxu0 %v520_v32 }
  0x24   :  { %376 = vmatmul.mubr.bf16.vlgmr.msra.gmra.mrb[0].mxu1 %v523_v34 }
  0xf6   :  { %v460_v36 = vpop.f32.mrb[0].mxu0 }
  0xf7   :  { %v482_v37 = vpop.f32.mrb[0].mxu1  ;;  %v461_v39 = vpop.f32.mrb[1].mxu0 }
  0xf8   :  { %v462_v40 = vadd.f32 %v461_v39, %v460_v36  ;;  %v483_v41 = vpop.f32.mrb[1].mxu1  ;;  %v463_v42 = vpop.f32.mrb[2].mxu0 }
  0xf9   :  { %v484_v43 = vadd.f32 %v483_v41, %v482_v37  ;;  %v485_v44 = vpop.f32.mrb[2].mxu1  ;;  %v464_v45 = vpop.f32.mrb[3].mxu0 }
  0xfa   :  { %v337_v46 = vadd.f32 %v462_v40, %v398_v38  ;;  %v465_v47 = vadd.f32 %v464_v45, %v463_v42  ;;  %v486_v48 = vpop.f32.mrb[3].mxu1 }
  0xfb   :  { %v487_v49 = vadd.f32 %v486_v48, %v485_v44 }
  0xfc   :  { %v378_v50 = vadd.f32 %v484_v43, %v337_v46  ;;  %v340_v51 = vadd.f32 %v465_v47, %v398_v38 }
  0xfe   :  { %v381_v52 = vadd.f32 %v487_v49, %v340_v51 }
 0x100   :  { %v442_v53 = vpack.c.bf16 %v381_v52, %v378_v50 }
 0x102   :  { %443 = vst [vmem:[%s663_s3] sm:$0xff] %v442_v53  }

</bundles_post_ra>
